<compile_context>
chip_gen: v7x
topology: tpu7x:2x2x1
jax: 0.10.0
libtpu: 0.0.40
codegen_flags: <defaults>
</compile_context>

<pallas_src>
import jax
import jax.numpy as jnp
from jax import lax
from jax.experimental import pallas as pl
from jax.experimental.pallas import tpu as pltpu

FEATURE_DIM = 768
CLASS_NUM = 10
LANE = 128  # lane-padded class dimension


def _round_up(x, m):
    return ((x + m - 1) // m) * m


def _choose_batch_tile(B):
    """Large tiles amortize the ~0.35us per-grid-step overhead; keep >=2 (even)
    steps for big B so v7x megacore balances the 'parallel' axis across TCs."""
    if B <= 8:
        return 8
    cap = 1024
    tb = max(8, min(cap, _round_up(pl.cdiv(B, 2), 8)))
    steps = pl.cdiv(B, tb)
    if steps > 1 and steps % 2 == 1:
        steps += 1
        tb = max(8, _round_up(pl.cdiv(B, steps), 8))
    return tb


def _passt_fc_kernel(x_ref, wfc_ref, bfc_ref, wf1_ref, bf1_ref, wf2_ref, bf2_ref,
                     emb_ref, of_ref):
    x = x_ref[...].astype(jnp.float32)

    # torch.nn.functional.normalize(p=2, dim=1): x / max(||x||_2, 1e-12)
    # == x * min(rsqrt(sum x^2), 1e12).  One EUP rsqrt + one VPU min per row,
    # then a broadcast multiply.
    sumsq = jnp.sum(x * x, axis=1, keepdims=True)
    inv_norm = jnp.minimum(lax.rsqrt(sumsq), 1e12)
    emb = x * inv_norm
    emb_ref[...] = emb

    # fc: Linear(768 -> C), lane-padded to 128 output columns (padded cols == 0).
    out = jnp.dot(emb, wfc_ref[...], preferred_element_type=jnp.float32) + bfc_ref[...]

    # focal = focal2(relu(focal1(out))); focal2's single real output column is
    # pre-placed at padded column C, all other columns stay exactly zero.
    h = jnp.maximum(
        jnp.dot(out, wf1_ref[...], preferred_element_type=jnp.float32) + bf1_ref[...],
        0.0,
    )
    focal = jnp.dot(h, wf2_ref[...], preferred_element_type=jnp.float32) + bf2_ref[...]

    # Pack: cols 0:C = fc outputs, col C = focal, rest zero.  out[:, C:] == 0 and
    # focal[:, != C] == 0, so a single add gives one lane-dense store.
    of_ref[...] = out + focal


def _pad2(w, rows, cols, row_off=0, col_off=0):
    w = jnp.asarray(w, jnp.float32)
    if w.ndim == 1:
        w = w[None, :]
    out = jnp.zeros((rows, cols), jnp.float32)
    return out.at[row_off:row_off + w.shape[0], col_off:col_off + w.shape[1]].set(w)


def passt_fc_forward(embeddings, params):
    """embeddings: [B, 768] float32.

    Returns (emb_normed [B,768], outputs [B,C], focal [B,1]).
    """
    B, D = embeddings.shape
    C = params["w_fc"].shape[1]
    CP = LANE
    assert C + 1 <= CP

    x = embeddings.astype(jnp.float32)

    # Zero-pad the (tiny) weights/biases to lane-dense 128-wide layouts once.
    w_fc = _pad2(params["w_fc"], D, CP)
    b_fc = _pad2(params["b_fc"], 1, CP)
    w_f1 = _pad2(params["w_f1"], CP, CP)
    b_f1 = _pad2(params["b_f1"], 1, CP)
    # focal2's single output column is placed at padded column C so the kernel
    # can pack (fc_out, focal) into one [B, CP] output with a single add.
    w_f2 = _pad2(params["w_f2"], CP, CP, row_off=0, col_off=C)
    b_f2 = _pad2(params["b_f2"], 1, CP, row_off=0, col_off=C)

    TB = _choose_batch_tile(B)
    grid = (pl.cdiv(B, TB),)

    const_w = lambda shape: pl.BlockSpec(shape, lambda i: (0, 0),
                                         pipeline_mode=pl.Buffered(1))

    emb, of_p = pl.pallas_call(
        _passt_fc_kernel,
        out_shape=(
            jax.ShapeDtypeStruct((B, D), jnp.float32),
            jax.ShapeDtypeStruct((B, CP), jnp.float32),
        ),
        grid_spec=pltpu.PrefetchScalarGridSpec(
            num_scalar_prefetch=0,
            grid=grid,
            in_specs=[
                pl.BlockSpec((TB, D), lambda i: (i, 0)),  # embeddings tile
                const_w((D, CP)),    # W_fc (pre-transposed, lane-padded)
                const_w((1, CP)),    # b_fc
                const_w((CP, CP)),   # W_focal1
                const_w((1, CP)),    # b_focal1
                const_w((CP, CP)),   # W_focal2 (real column placed at col C)
                const_w((1, CP)),    # b_focal2 (real entry at col C)
            ],
            out_specs=[
                pl.BlockSpec((TB, D), lambda i: (i, 0)),    # normalized embeddings
                pl.BlockSpec((TB, CP), lambda i: (i, 0)),   # packed (fc out | focal)
            ],
        ),
        compiler_params=pltpu.CompilerParams(
            dimension_semantics=("parallel",),
            vmem_limit_bytes=32 * 1024 * 1024,
        ),
    )(x, w_fc, b_fc, w_f1, b_f1, w_f2, b_f2)

    # Unpack the lane-padded combined output back to logical widths.
    return emb, of_p[:, :C], of_p[:, C:C + 1]


def init_params(key, feature_dim=FEATURE_DIM, class_num=CLASS_NUM):
    """Deterministic kaiming-normal weights, zero biases (matches init_weights for nn.Linear)."""
    k1, k2, k3 = jax.random.split(key, 3)
    # kaiming_normal_: std = sqrt(2 / fan_in); weights stored as [in, out] (pre-transposed)
    w_fc = jax.random.normal(k1, (feature_dim, class_num), jnp.float32) * jnp.sqrt(2.0 / feature_dim)
    w_f1 = jax.random.normal(k2, (class_num, class_num), jnp.float32) * jnp.sqrt(2.0 / class_num)
    w_f2 = jax.random.normal(k3, (class_num, 1), jnp.float32) * jnp.sqrt(2.0 / class_num)
    return {
        "w_fc": w_fc, "b_fc": jnp.zeros((1, class_num), jnp.float32),
        "w_f1": w_f1, "b_f1": jnp.zeros((1, class_num), jnp.float32),
        "w_f2": w_f2, "b_f2": jnp.zeros((1, 1), jnp.float32),
    }


def _reference_forward(embeddings, params):
    x = embeddings.astype(jnp.float32)
    emb = x / jnp.maximum(jnp.sqrt(jnp.sum(x * x, axis=1, keepdims=True)), 1e-12)
    out = emb @ params["w_fc"] + params["b_fc"]
    h = jnp.maximum(out @ params["w_f1"] + params["b_f1"], 0.0)
    focal = h @ params["w_f2"] + params["b_f2"]
    return emb, out, focal


if __name__ == "__main__":
    key = jax.random.PRNGKey(0)
    k_emb, k_param = jax.random.split(key)

    batch = 2
    # Stand-in for the PaSST backbone's 768-dim embedding output.
    embeddings_in = jax.random.normal(k_emb, (batch, FEATURE_DIM), jnp.float32)
    params = init_params(k_param)

    emb, outputs, focal = passt_fc_forward(embeddings_in, params)
    jax.block_until_ready((emb, outputs, focal))

    # Sanity check against a pure-JAX reference.
    ref_emb, ref_out, ref_focal = _reference_forward(embeddings_in, params)
    assert emb.shape == (batch, FEATURE_DIM)
    assert outputs.shape == (batch, CLASS_NUM)
    assert focal.shape == (batch, 1)
    assert jnp.allclose(emb, ref_emb, atol=1e-5)
    assert jnp.allclose(outputs, ref_out, atol=1e-4)
    assert jnp.allclose(focal, ref_focal, atol=1e-4)

    print("KERNEL_OK")
</pallas_src>

<mosaic_0001>
module attributes {stable_mosaic.version = 11 : i64} {
  func.func @_passt_fc_kernel(%arg0: i32, %arg1: memref<8x768xf32, #tpu.memory_space<vmem>>, %arg2: memref<768x128xf32, #tpu.memory_space<vmem>>, %arg3: memref<1x128xf32, #tpu.memory_space<vmem>>, %arg4: memref<128x128xf32, #tpu.memory_space<vmem>>, %arg5: memref<1x128xf32, #tpu.memory_space<vmem>>, %arg6: memref<128x128xf32, #tpu.memory_space<vmem>>, %arg7: memref<1x128xf32, #tpu.memory_space<vmem>>, %arg8: memref<8x768xf32, #tpu.memory_space<vmem>>, %arg9: memref<8x128xf32, #tpu.memory_space<vmem>>) attributes {dimension_semantics = [#tpu.dimension_semantics<parallel>], iteration_bounds = array<i64: 1>, scalar_prefetch = 0 : i64, scratch_operands = 0 : i64, tpu.core_type = #tpu.core_type<tc>, window_params = [{transform_indices = @transform_0, window_bounds = array<i64: 8, 768>}, {pipeline_mode = #tpu.pipeline_mode<synchronous>, transform_indices = @transform_1, window_bounds = array<i64: 768, 128>}, {pipeline_mode = #tpu.pipeline_mode<synchronous>, transform_indices = @transform_2, window_bounds = array<i64: 1, 128>}, {pipeline_mode = #tpu.pipeline_mode<synchronous>, transform_indices = @transform_3, window_bounds = array<i64: 128, 128>}, {pipeline_mode = #tpu.pipeline_mode<synchronous>, transform_indices = @transform_4, window_bounds = array<i64: 1, 128>}, {pipeline_mode = #tpu.pipeline_mode<synchronous>, transform_indices = @transform_5, window_bounds = array<i64: 128, 128>}, {pipeline_mode = #tpu.pipeline_mode<synchronous>, transform_indices = @transform_6, window_bounds = array<i64: 1, 128>}, {transform_indices = @transform_7, window_bounds = array<i64: 8, 768>}, {transform_indices = @transform_8, window_bounds = array<i64: 8, 128>}]} {
    %c0 = arith.constant 0 : index
    %c0_0 = arith.constant 0 : index
    %0 = vector.load %arg1[%c0, %c0_0] : memref<8x768xf32, #tpu.memory_space<vmem>>, vector<8x768xf32>
    %1 = arith.mulf %0, %0 : vector<8x768xf32>
    %cst = arith.constant dense<0.000000e+00> : vector<8xf32>
    %2 = vector.multi_reduction <add>, %1, %cst [1] : vector<8x768xf32> to vector<8xf32>
    %3 = vector.shape_cast %2 : vector<8xf32> to vector<8x1xf32>
    %4 = math.rsqrt %3 : vector<8x1xf32>
    %cst_1 = arith.constant 9.99999995E+11 : f32
    %5 = vector.broadcast %cst_1 : f32 to vector<8x1xf32>
    %6 = arith.minimumf %4, %5 : vector<8x1xf32>
    %7 = vector.broadcast %6 : vector<8x1xf32> to vector<8x768xf32>
    %8 = arith.mulf %0, %7 : vector<8x768xf32>
    %c0_2 = arith.constant 0 : index
    %c0_3 = arith.constant 0 : index
    %9 = vector.load %arg8[%c0_2, %c0_3] : memref<8x768xf32, #tpu.memory_space<vmem>>, vector<8x768xf32>
    tpu.vector_store %arg8[%c0_2, %c0_3], %8 {strides = array<i32>} : memref<8x768xf32, #tpu.memory_space<vmem>>, vector<8x768xf32>,
    %c0_4 = arith.constant 0 : index
    %c0_5 = arith.constant 0 : index
    %10 = vector.load %arg2[%c0_4, %c0_5] : memref<768x128xf32, #tpu.memory_space<vmem>>, vector<768x128xf32>
    %cst_6 = arith.constant dense<0.000000e+00> : vector<8x128xf32>
    %11 = tpu.matmul %8, %10, %cst_6 {dimension_numbers = #tpu.dot_dimension_numbers<[1], [0], [0], [1], [0, 0, 1, 1], [], []>} : vector<8x768xf32>, vector<768x128xf32>, vector<8x128xf32> -> vector<8x128xf32>
    %c0_7 = arith.constant 0 : index
    %c0_8 = arith.constant 0 : index
    %12 = vector.load %arg3[%c0_7, %c0_8] : memref<1x128xf32, #tpu.memory_space<vmem>>, vector<1x128xf32>
    %13 = vector.broadcast %12 : vector<1x128xf32> to vector<8x128xf32>
    %14 = arith.addf %11, %13 : vector<8x128xf32>
    %c0_9 = arith.constant 0 : index
    %c0_10 = arith.constant 0 : index
    %15 = vector.load %arg4[%c0_9, %c0_10] : memref<128x128xf32, #tpu.memory_space<vmem>>, vector<128x128xf32>
    %cst_11 = arith.constant dense<0.000000e+00> : vector<8x128xf32>
    %16 = tpu.matmul %14, %15, %cst_11 {dimension_numbers = #tpu.dot_dimension_numbers<[1], [0], [0], [1], [0, 0, 1, 1], [], []>} : vector<8x128xf32>, vector<128x128xf32>, vector<8x128xf32> -> vector<8x128xf32>
    %c0_12 = arith.constant 0 : index
    %c0_13 = arith.constant 0 : index
    %17 = vector.load %arg5[%c0_12, %c0_13] : memref<1x128xf32, #tpu.memory_space<vmem>>, vector<1x128xf32>
    %18 = vector.broadcast %17 : vector<1x128xf32> to vector<8x128xf32>
    %19 = arith.addf %16, %18 : vector<8x128xf32>
    %cst_14 = arith.constant 0.000000e+00 : f32
    %20 = vector.broadcast %cst_14 : f32 to vector<8x128xf32>
    %21 = arith.maximumf %19, %20 : vector<8x128xf32>
    %c0_15 = arith.constant 0 : index
    %c0_16 = arith.constant 0 : index
    %22 = vector.load %arg6[%c0_15, %c0_16] : memref<128x128xf32, #tpu.memory_space<vmem>>, vector<128x128xf32>
    %cst_17 = arith.constant dense<0.000000e+00> : vector<8x128xf32>
    %23 = tpu.matmul %21, %22, %cst_17 {dimension_numbers = #tpu.dot_dimension_numbers<[1], [0], [0], [1], [0, 0, 1, 1], [], []>} : vector<8x128xf32>, vector<128x128xf32>, vector<8x128xf32> -> vector<8x128xf32>
    %c0_18 = arith.constant 0 : index
    %c0_19 = arith.constant 0 : index
    %24 = vector.load %arg7[%c0_18, %c0_19] : memref<1x128xf32, #tpu.memory_space<vmem>>, vector<1x128xf32>
    %25 = vector.broadcast %24 : vector<1x128xf32> to vector<8x128xf32>
    %26 = arith.addf %23, %25 : vector<8x128xf32>
    %27 = arith.addf %14, %26 : vector<8x128xf32>
    %c0_20 = arith.constant 0 : index
    %c0_21 = arith.constant 0 : index
    %28 = vector.load %arg9[%c0_20, %c0_21] : memref<8x128xf32, #tpu.memory_space<vmem>>, vector<8x128xf32>
    tpu.vector_store %arg9[%c0_20, %c0_21], %27 {strides = array<i32>} : memref<8x128xf32, #tpu.memory_space<vmem>>, vector<8x128xf32>,
    return
  }
  func.func @transform_0(%arg0: i32) -> (i32, i32) {
    %c0_i32 = arith.constant 0 : i32
    %c0_i32_0 = arith.constant 0 : i32
    return %arg0, %c0_i32 : i32, i32
  }
  func.func @transform_1(%arg0: i32) -> (i32, i32) {
    %c0_i32 = arith.constant 0 : i32
    %c0_i32_0 = arith.constant 0 : i32
    %c0_i32_1 = arith.constant 0 : i32
    return %c0_i32, %c0_i32_0 : i32, i32
  }
  func.func @transform_2(%arg0: i32) -> (i32, i32) {
    %c0_i32 = arith.constant 0 : i32
    %c0_i32_0 = arith.constant 0 : i32
    %c0_i32_1 = arith.constant 0 : i32
    return %c0_i32, %c0_i32_0 : i32, i32
  }
  func.func @transform_3(%arg0: i32) -> (i32, i32) {
    %c0_i32 = arith.constant 0 : i32
    %c0_i32_0 = arith.constant 0 : i32
    %c0_i32_1 = arith.constant 0 : i32
    return %c0_i32, %c0_i32_0 : i32, i32
  }
  func.func @transform_4(%arg0: i32) -> (i32, i32) {
    %c0_i32 = arith.constant 0 : i32
    %c0_i32_0 = arith.constant 0 : i32
    %c0_i32_1 = arith.constant 0 : i32
    return %c0_i32, %c0_i32_0 : i32, i32
  }
  func.func @transform_5(%arg0: i32) -> (i32, i32) {
    %c0_i32 = arith.constant 0 : i32
    %c0_i32_0 = arith.constant 0 : i32
    %c0_i32_1 = arith.constant 0 : i32
    return %c0_i32, %c0_i32_0 : i32, i32
  }
  func.func @transform_6(%arg0: i32) -> (i32, i32) {
    %c0_i32 = arith.constant 0 : i32
    %c0_i32_0 = arith.constant 0 : i32
    %c0_i32_1 = arith.constant 0 : i32
    return %c0_i32, %c0_i32_0 : i32, i32
  }
  func.func @transform_7(%arg0: i32) -> (i32, i32) {
    %c0_i32 = arith.constant 0 : i32
    %c0_i32_0 = arith.constant 0 : i32
    return %arg0, %c0_i32 : i32, i32
  }
  func.func @transform_8(%arg0: i32) -> (i32, i32) {
    %c0_i32 = arith.constant 0 : i32
    %c0_i32_0 = arith.constant 0 : i32
    return %arg0, %c0_i32 : i32, i32
  }
}

</mosaic_0001>

<bundles_post_ra>
// kernel: tpu_custom_call.1
= control target key start
LH: loop header
LB: loop body
LE: loop exit
PB: predicated region body
PF: predicated region fallthrough
CT: control target
= control target key end

     0   :  { %14 = vsyncpa [#allocation3], 0  ;;  %s1605_s0 = inlined_call_operand.hbm [shape: f32[2,768], index: 0, kind: input, shape index: {}]   ;;  %s1606_s1 = inlined_call_operand.hbm [shape: f32[768,128], index: 1, kind: input, shape index: {}]   ;;  %s1607_s2 = inlined_call_operand.vmem [shape: f32[1,128], index: 2, kind: input, shape index: {}]   ;;  %s1608_s3 = inlined_call_operand.hbm [shape: f32[128,128], index: 3, kind: input, shape index: {}]   ;;  %s1609_s4 = inlined_call_operand.vmem [shape: f32[1,128], index: 4, kind: input, shape index: {}]   ;;  %s1610_s5 = inlined_call_operand.hbm [shape: f32[128,128], index: 5, kind: input, shape index: {}]   ;;  %s1611_s6 = inlined_call_operand.vmem [shape: f32[1,128], index: 6, kind: input, shape index: {}]   ;;  %s1612_s7 = inlined_call_operand.hbm [shape: f32[2,768], index: 7, kind: output, shape index: {0}]   ;;  %s1613_s8 = inlined_call_operand.hbm [shape: f32[2,128], index: 8, kind: output, shape index: {1}]  }
   0x1   :  { %15 = vsyncpa [#allocation6], 0 }
   0x2   :  { %16 = vsyncpa [#allocation9], 0 }
   0x3   :  { %17 = vsyncpa [#allocation4], 0 }
   0x4   :  { %18 = vsyncpa [#allocation12], 0 }
   0x5   :  { %23 = vsyncadd [#allocation3], 576  ;;  %s1352_s27 = smov [#allocation5]   ;;  %s1210_s9 = scalar_lea.hbm %s1606_s1, 12288 }
   0x6   :  { %s36_s28 = sshll.u32 %s1352_s27, 4  ;;  %p1211_p0 = scmp.ne.s32.totalorder %s1606_s1, %s1210_s9  ;;  %s37_s28 = int_to_ptr.vmem [resolvable:$true] %s36_s28 }
   0x7   :  { %p1214_p1 = scmp.lt.u32.totalorder %s1210_s9, %s1606_s1 }
   0x9   :  { %p1216_p2 = pnand %p1214_p1, %p1211_p0 }
   0xb   :  { %1219 = shalt.err (!%p1216_p2)
}
   0xc   :  { %s1220_s14 = scalar_lea.vmem %s37_s28, 12288  ;;  %p1225_p4 = scmp.lt.s32.totalorder %s37_s28, %s37_s28 }
   0xd   :  { %p1221_p3 = scmp.ne.s32.totalorder %s37_s28, %s1220_s14  ;;  %p1226_p5 = scmp.lt.s32.totalorder %s1220_s14, %s1220_s14 }
   0xf   :  { %p1227_p6 = por %p1226_p5, %p1225_p4 }
  0x11   :  { %p1228_p7 = pnand %p1227_p6, %p1221_p3 }
  0x13   :  { %1231 = shalt.err (!%p1228_p7)
}
  0x14   :  { %s1353_s15 = smov 128   ;;  %s1354_s16 = smov 8  }
  0x15   :  { %42 = dma.hbm_to_vmem [thread:$0]  %s1606_s1, 12288, %s37_s28, [#allocation6], %s1353_s15, %s1353_s15, %s1354_s16  }
  0x16   :  { %s1355_s19 = smov [#allocation2]   ;;  %s1232_s23 = scalar_lea.hbm %s1605_s0, 192 }
  0x17   :  { %s24_s20 = sshll.u32 %s1355_s19, 4  ;;  %p1233_p8 = scmp.ne.s32.totalorder %s1605_s0, %s1232_s23  ;;  %s25_s20 = int_to_ptr.vmem [resolvable:$true] %s24_s20 }
  0x18   :  { %p1236_p9 = scmp.lt.u32.totalorder %s1232_s23, %s1605_s0 }
  0x1a   :  { %p1238_p10 = pnand %p1236_p9, %p1233_p8 }
  0x1c   :  { %1241 = shalt.err (!%p1238_p10)
}
  0x1d   :  { %s1242_s29 = scalar_lea.vmem %s25_s20, 192  ;;  %s1246_s1 = scalar_lea.vmem %s25_s20, 768 }
  0x1e   :  { %p1243_p11 = scmp.ne.s32.totalorder %s25_s20, %s1242_s29  ;;  %p1247_p12 = scmp.lt.s32.totalorder %s25_s20, %s25_s20 }
  0x1f   :  { %p1248_p13 = scmp.lt.s32.totalorder %s1246_s1, %s1242_s29 }
  0x21   :  { %p1249_p0 = por %p1248_p13, %p1247_p12 }
  0x23   :  { %p1250_p1 = pnand %p1249_p0, %p1243_p11 }
  0x25   :  { %1253 = shalt.err (!%p1250_p1)
}
  0x26   :  { %s1356_s28 = smov 192   ;;  %s1357_s30 = smov 12  }
  0x27   :  { %30 = dma.hbm_to_vmem [thread:$0]  %s1605_s0, 192, %s25_s20, [#allocation3], %s1356_s28, %s1356_s28, %s1357_s30  }
  0x28   :  { %s1358_s11 = smov [#allocation7]   ;;  %s1359_s13 = smov [#allocation8]  }
  0x29   :  { %s50_s12 = sshll.u32 %s1358_s11, 4  ;;  %s64_s14 = sshll.u32 %s1359_s13, 4  ;;  %s51_s12 = int_to_ptr.vmem [resolvable:$true] %s50_s12  ;;  %s1447_s14 = int_to_ptr.vmem [resolvable:$true] %s64_s14 }
  0x2a   :  { %s1254_s19 = scalar_lea.hbm %s1608_s3, 2048 }
  0x2b   :  { %p1255_p2 = scmp.ne.s32.totalorder %s1608_s3, %s1254_s19  ;;  %p1258_p3 = scmp.lt.u32.totalorder %s1254_s19, %s1608_s3 }
  0x2d   :  { %p1260_p4 = pnand %p1258_p3, %p1255_p2 }
  0x2f   :  { %1263 = shalt.err (!%p1260_p4)
}
  0x30   :  { %s1264_s0 = scalar_lea.vmem %s51_s12, 2048  ;;  %p1269_p6 = scmp.lt.s32.totalorder %s51_s12, %s51_s12 }
  0x31   :  { %p1265_p5 = scmp.ne.s32.totalorder %s51_s12, %s1264_s0  ;;  %p1270_p7 = scmp.lt.s32.totalorder %s1264_s0, %s1264_s0 }
  0x33   :  { %p1271_p8 = por %p1270_p7, %p1269_p6 }
  0x35   :  { %p1272_p9 = pnand %p1271_p8, %p1265_p5 }
  0x37   :  { %1275 = shalt.err (!%p1272_p9)
}
  0x38   :  { %56 = dma.hbm_to_vmem [thread:$0]  %s1608_s3, 2048, %s51_s12, [#allocation6], %s1353_s15, %s1353_s15, %s1354_s16  }
  0x39   :  { %s1276_s29 = scalar_lea.hbm %s1610_s5, 2048 }
  0x3a   :  { %p1277_p10 = scmp.ne.s32.totalorder %s1610_s5, %s1276_s29  ;;  %p1280_p11 = scmp.lt.u32.totalorder %s1276_s29, %s1610_s5 }
  0x3c   :  { %p1282_p12 = pnand %p1280_p11, %p1277_p10 }
  0x3e   :  { %1285 = shalt.err (!%p1282_p12)
}
  0x3f   :  { %s1286_s13 = scalar_lea.vmem %s1447_s14, 2048  ;;  %p1291_p0 = scmp.lt.s32.totalorder %s1447_s14, %s1447_s14 }
  0x40   :  { %p1287_p13 = scmp.ne.s32.totalorder %s1447_s14, %s1286_s13  ;;  %p1292_p1 = scmp.lt.s32.totalorder %s1286_s13, %s1286_s13 }
  0x42   :  { %p1293_p2 = por %p1292_p1, %p1291_p0 }
  0x44   :  { %p1294_p3 = pnand %p1293_p2, %p1287_p13 }
  0x46   :  { %1297 = shalt.err (!%p1294_p3)
}
  0x47   :  { %70 = dma.hbm_to_vmem [thread:$0]  %s1610_s5, 2048, %s1447_s14, [#allocation9], %s1353_s15, %s1353_s15, %s1354_s16  }
  0x48   :  { %1342 = dma.done.wait [#allocation3], 768  }
  0x49   :  { %1343 = vsyncadd [#allocation3], 4294966528 }
  0x4a   :  { %1344 = dma.done.wait [#allocation6], 14336  }
  0x4b   :  { %1345 = vsyncadd [#allocation6], 4294952960 }
  0x4c   :  { %1346 = dma.done.wait [#allocation9], 2048  }
  0x4d   :  { %1347 = vsyncadd [#allocation9], 4294965248  ;;  %v116_v0 = vlaneseq  ;;  %v1360_v1 = vmov 1983009808   ;;  %v1486_v5 = vld [vmem:[#allocation2] sm:$0xff]  ;;  %v1490_v7 = vld [vmem:[#allocation2 + $0xc] sm:$0xff] }
  0x4e   :  { %v114_v2 = vunpack.c.l.s4 %v1360_v1  ;;  %v1488_v6 = vld [vmem:[#allocation2 + $0x8] sm:$0xf]  ;;  %v1492_v8 = vld [vmem:[#allocation2 + $0x14] sm:$0xf]  ;;  %v1494_v9 = vld [vmem:[#allocation2 + $0x18] sm:$0xff]  ;;  %v93_v11 = vmul.f32 %v1486_v5, %v1486_v5  ;;  %v95_v13 = vmul.f32 %v1490_v7, %v1490_v7  ;;  %vm1366_vm0 = vmmov 0  }
  0x4f   :  { %v1484_v4 = vshrl.u32 %v116_v0, 7  ;;  %v1496_v10 = vld [vmem:[#allocation2 + $0x20] sm:$0xf]  ;;  %v94_v12 = vmul.f32 %v1488_v6, %v1488_v6  ;;  %v1507_v15 = vld [vmem:[#allocation2 + $0x24] sm:$0xff]  ;;  %v1509_v16 = vld [vmem:[#allocation2 + $0x2c] sm:$0xf]  ;;  %v96_v17 = vmul.f32 %v1492_v8, %v1492_v8  ;;  %v97_v18 = vmul.f32 %v1494_v9, %v1494_v9 }
  0x50   :  { %v115_v3 = vunpack.c.0.s8 %v114_v2  ;;  %v98_v19 = vmul.f32 %v1496_v10, %v1496_v10  ;;  %v243_v20 = vld [vmem:[#allocation5 + $0x80] sm:$0xff]  ;;  %v99_v21 = vmul.f32 %v1507_v15, %v1507_v15  ;;  %v100_v22 = vmul.f32 %v1509_v16, %v1509_v16  ;;  %v244_v25 = vld [vmem:[#allocation5 + $0x88] sm:$0xff]  ;;  %v245_v39 = vld [vmem:[#allocation5 + $0x90] sm:$0xff] }
  0x51   :  { %v109_v23 = vcombine.low %v93_v11, %v95_v13  ;;  %v110_v24 = vcombine.high %v93_v11, %v95_v13  ;;  %v227_v26 = vld [vmem:[#allocation5] sm:$0xff]  ;;  %v228_v27 = vld [vmem:[#allocation5 + $0x8] sm:$0xff]  ;;  %v145_v28 = vcombine.low %v94_v12, %v96_v17  ;;  %v1044_v29 = vpack.c.bf16 %v244_v25, %v243_v20  ;;  %v246_v40 = vld [vmem:[#allocation5 + $0x98] sm:$0xff] }
  0x52   :  { %v1505_v14 = vsub.s32 %v115_v3, %v1484_v4  ;;  %v1046_v30 = vpack.c.bf16 %v228_v27, %v227_v26  ;;  %v275_v31 = vld [vmem:[#allocation5 + $0x180] sm:$0xff]  ;;  %v276_v32 = vld [vmem:[#allocation5 + $0x188] sm:$0xff]  ;;  %v111_v34 = vcombine.low %v97_v18, %v99_v21  ;;  %v112_v35 = vcombine.high %v97_v18, %v99_v21  ;;  %v229_v44 = vld [vmem:[#allocation5 + $0x10] sm:$0xff] }
  0x53   :  { %v259_v33 = vld [vmem:[#allocation5 + $0x100] sm:$0xff]  ;;  %v260_v38 = vld [vmem:[#allocation5 + $0x108] sm:$0xff]  ;;  %v146_v41 = vcombine.low %v98_v19, %v100_v22  ;;  %1045 = vmatprep.subr.bf16.mxu0 %v1044_v29  ;;  %v1076_v42 = vpack.c.bf16 %v276_v32, %v275_v31  ;;  %v230_v45 = vld [vmem:[#allocation5 + $0x18] sm:$0xff]  ;;  %v1048_v49 = vpack.c.bf16 %v246_v40, %v245_v39 }
  0x54   :  { %v119_v36 = vrot.slane %v109_v23, %v1505_v14  ;;  %v126_v37 = vrot.slane %v110_v24, %v1505_v14  ;;  %v1078_v43 = vpack.c.bf16 %v260_v38, %v259_v33  ;;  %v277_v46 = vld [vmem:[#allocation5 + $0x190] sm:$0xff]  ;;  %v133_v47 = vrot.slane %v111_v34, %v1505_v14  ;;  %1047 = vmatpush3.bf16.msra.mxu0 %v1046_v30  ;;  %v278_v51 = vld [vmem:[#allocation5 + $0x198] sm:$0xff]  ;;  %v247_v12 = vld [vmem:[#allocation5 + $0xa0] sm:$0xff] }
  0x55   :  { %v140_v48 = vrot.slane %v112_v35, %v1505_v14  ;;  %v1050_v50 = vpack.c.bf16 %v230_v45, %v229_v44  ;;  %v261_v52 = vld [vmem:[#allocation5 + $0x110] sm:$0xff]  ;;  %v262_v53 = vld [vmem:[#allocation5 + $0x118] sm:$0xff]  ;;  %v153_v54 = vrot.slane %v145_v28, %v1505_v14  ;;  %v160_v55 = vrot.slane %v146_v41, %v1505_v14  ;;  %1077 = vmatprep.subr.bf16.mxu1 %v1076_v42  ;;  %v248_v13 = vld [vmem:[#allocation5 + $0xa8] sm:$0xff] }
  0x56   :  { %v1080_v56 = vpack.c.bf16 %v278_v51, %v277_v46  ;;  %v141_v57 = vcombine.low %v119_v36, %v133_v47  ;;  %v142_v58 = vcombine.high %v119_v36, %v133_v47  ;;  %1079 = vmatpush3.bf16.msra.mxu1 %v1078_v43  ;;  %v1082_v60 = vpack.c.bf16 %v262_v53, %v261_v52  ;;  %v231_v18 = vld [vmem:[#allocation5 + $0x20] sm:$0xff]  ;;  %v232_v19 = vld [vmem:[#allocation5 + $0x28] sm:$0xff]  ;;  %v249_v27 = vld [vmem:[#allocation5 + $0xb0] sm:$0xff] }
  0x57   :  { %v143_v59 = vcombine.low %v126_v37, %v140_v48  ;;  %1049 = vmatprep.subr.bf16.mxu0 %v1048_v49  ;;  %v144_v61 = vcombine.high %v126_v37, %v140_v48  ;;  %v161_v63 = vcombine.low %v153_v54, %v160_v55  ;;  %v162_v1 = vcombine.high %v153_v54, %v160_v55  ;;  %v279_v20 = vld [vmem:[#allocation5 + $0x1a0] sm:$0xff]  ;;  %v280_v22 = vld [vmem:[#allocation5 + $0x1a8] sm:$0xff]  ;;  %v250_v28 = vld [vmem:[#allocation5 + $0xb8] sm:$0xff] }
  0x58   :  { %1081 = vmatprep.subr.bf16.mxu1 %v1080_v56  ;;  %v169_v62 = vadd.f32 %v142_v58, %v141_v57  ;;  %1051 = vmatpush3.bf16.msra.mxu0 %v1050_v50  ;;  %v1052_v17 = vpack.c.bf16 %v248_v13, %v247_v12  ;;  %v1054_v21 = vpack.c.bf16 %v232_v19, %v231_v18  ;;  %v263_v23 = vld [vmem:[#allocation5 + $0x120] sm:$0xff]  ;;  %v264_v24 = vld [vmem:[#allocation5 + $0x128] sm:$0xff]  ;;  %v233_v30 = vld [vmem:[#allocation5 + $0x30] sm:$0xff] }
  0x59   :  { %v1084_v25 = vpack.c.bf16 %v280_v22, %v279_v20  ;;  %v1086_v26 = vpack.c.bf16 %v264_v24, %v263_v23  ;;  %v1056_v29 = vpack.c.bf16 %v250_v28, %v249_v27  ;;  %v234_v31 = vld [vmem:[#allocation5 + $0x38] sm:$0xff]  ;;  %v281_v32 = vld [vmem:[#allocation5 + $0x1b0] sm:$0xff]  ;;  %v251_v39 = vld [vmem:[#allocation5 + $0xc0] sm:$0xff] }
  0x5a   :  { %v170_v0 = vadd.f32 %v169_v62, %v143_v59  ;;  %1083 = vmatpush3.bf16.msra.mxu1 %v1082_v60  ;;  %1053 = vmatprep.subr.bf16.mxu0 %v1052_v17  ;;  %v1058_v33 = vpack.c.bf16 %v234_v31, %v233_v30  ;;  %v282_v34 = vld [vmem:[#allocation5 + $0x1b8] sm:$0xff]  ;;  %v265_v35 = vld [vmem:[#allocation5 + $0x130] sm:$0xff]  ;;  %v252_v40 = vld [vmem:[#allocation5 + $0xc8] sm:$0xff] }
  0x5b   :  { %1085 = vmatprep.subr.bf16.mxu1 %v1084_v25  ;;  %v266_v36 = vld [vmem:[#allocation5 + $0x138] sm:$0xff]  ;;  %v1088_v37 = vpack.c.bf16 %v282_v34, %v281_v32  ;;  %v1060_v41 = vpack.c.bf16 %v252_v40, %v251_v39  ;;  %v235_v42 = vld [vmem:[#allocation5 + $0x40] sm:$0xff]  ;;  %v236_v43 = vld [vmem:[#allocation5 + $0x48] sm:$0xff]  ;;  %v1362_v39 = vmov 842150450  }
  0x5c   :  { %v171_v2 = vadd.f32 %v170_v0, %v144_v61  ;;  %1055 = vmatpush3.bf16.msra.mxu0 %v1054_v21  ;;  %v1090_v38 = vpack.c.bf16 %v266_v36, %v265_v35  ;;  %v283_v44 = vld [vmem:[#allocation5 + $0x1c0] sm:$0xff]  ;;  %v1062_v45 = vpack.c.bf16 %v236_v43, %v235_v42  ;;  %v284_v46 = vld [vmem:[#allocation5 + $0x1c8] sm:$0xff]  ;;  %v253_v51 = vld [vmem:[#allocation5 + $0xd0] sm:$0xff]  ;;  %v187_v40 = vunpack.c.l.s4 %v1362_v39 }
  0x5d   :  { %1057 = vmatprep.subr.bf16.mxu0 %v1056_v29  ;;  %v267_v47 = vld [vmem:[#allocation5 + $0x140] sm:$0xff]  ;;  %v268_v48 = vld [vmem:[#allocation5 + $0x148] sm:$0xff]  ;;  %v1092_v49 = vpack.c.bf16 %v284_v46, %v283_v44  ;;  %v254_v52 = vld [vmem:[#allocation5 + $0xd8] sm:$0xff]  ;;  %v1364_v43 = vmov 1987475062  }
  0x5e   :  { %v172_v3 = vadd.f32 %v171_v2, %v161_v63  ;;  %1087 = vmatpush3.bf16.msra.mxu1 %v1086_v26  ;;  %v1094_v50 = vpack.c.bf16 %v268_v48, %v267_v47  ;;  %v1064_v53 = vpack.c.bf16 %v254_v52, %v253_v51  ;;  %v237_v54 = vld [vmem:[#allocation5 + $0x50] sm:$0xff]  ;;  %v238_v55 = vld [vmem:[#allocation5 + $0x58] sm:$0xff]  ;;  %v255_v63 = vld [vmem:[#allocation5 + $0xe0] sm:$0xff]  ;;  %v201_v44 = vunpack.c.l.s4 %v1364_v43 }
  0x5f   :  { %1089 = vmatprep.subr.bf16.mxu1 %v1088_v37  ;;  %v285_v56 = vld [vmem:[#allocation5 + $0x1d0] sm:$0xff]  ;;  %v1066_v57 = vpack.c.bf16 %v238_v55, %v237_v54  ;;  %v286_v58 = vld [vmem:[#allocation5 + $0x1d8] sm:$0xff]  ;;  %v256_v0 = vld [vmem:[#allocation5 + $0xe8] sm:$0xff]  ;;  %v1361_v37 = vmov 269488144   ;;  %v188_v46 = vunpack.c.0.s8 %v187_v40 }
  0x60   :  { %v173_v11 = vadd.f32 %v172_v3, %v162_v1  ;;  %1059 = vmatpush3.bf16.msra.mxu0 %v1058_v33  ;;  %v269_v59 = vld [vmem:[#allocation5 + $0x150] sm:$0xff]  ;;  %v270_v60 = vld [vmem:[#allocation5 + $0x158] sm:$0xff]  ;;  %v1096_v61 = vpack.c.bf16 %v286_v58, %v285_v56  ;;  %v239_v1 = vld [vmem:[#allocation5 + $0x60] sm:$0xff]  ;;  %v1068_v2 = vpack.c.bf16 %v256_v0, %v255_v63  ;;  %v202_v48 = vunpack.c.0.s8 %v201_v44 }
  0x61   :  { %1061 = vmatprep.subr.bf16.mxu0 %v1060_v41  ;;  %v1098_v62 = vpack.c.bf16 %v270_v60, %v269_v59  ;;  %v240_v3 = vld [vmem:[#allocation5 + $0x68] sm:$0xff]  ;;  %v271_v18 = vld [vmem:[#allocation5 + $0x160] sm:$0xff]  ;;  %v257_v20 = vld [vmem:[#allocation5 + $0xf0] sm:$0xff]  ;;  %v1363_v41 = vmov 1414812756  }
  0x62   :  { %174 = vadd.xlane.f32.xlu0 %v173_v11  ;;  %1091 = vmatpush3.bf16.msra.mxu1 %v1090_v38  ;;  %v287_v11 = vld [vmem:[#allocation5 + $0x1e0] sm:$0xff]  ;;  %v288_v12 = vld [vmem:[#allocation5 + $0x1e8] sm:$0xff]  ;;  %v1070_v13 = vpack.c.bf16 %v240_v3, %v239_v1  ;;  %v258_v22 = vld [vmem:[#allocation5 + $0xf8] sm:$0xff]  ;;  %v180_v38 = vunpack.c.l.s4 %v1361_v37  ;;  %v194_v42 = vunpack.c.l.s4 %v1363_v41  ;;  %v205_v52 = vsub.s32 %v202_v48, %v1484_v4 }
  0x63   :  { %1093 = vmatprep.subr.bf16.mxu1 %v1092_v49  ;;  %v1100_v17 = vpack.c.bf16 %v288_v12, %v287_v11  ;;  %v272_v19 = vld [vmem:[#allocation5 + $0x168] sm:$0xff]  ;;  %v241_v23 = vld [vmem:[#allocation5 + $0x70] sm:$0xff]  ;;  %v242_v24 = vld [vmem:[#allocation5 + $0x78] sm:$0xff]  ;;  %v1072_v25 = vpack.c.bf16 %v258_v22, %v257_v20 }
  0x64   :  { %1063 = vmatpush3.bf16.msra.mxu0 %v1062_v45  ;;  %v1102_v21 = vpack.c.bf16 %v272_v19, %v271_v18  ;;  %v289_v26 = vld [vmem:[#allocation5 + $0x1f0] sm:$0xff]  ;;  %v290_v27 = vld [vmem:[#allocation5 + $0x1f8] sm:$0xff]  ;;  %v1074_v29 = vpack.c.bf16 %v242_v24, %v241_v23  ;;  %v307_v33 = vld [vmem:[#allocation5 + $0x280] sm:$0xff]  ;;  %v181_v45 = vunpack.c.0.s8 %v180_v38  ;;  %v195_v47 = vunpack.c.0.s8 %v194_v42 }
  0x65   :  { %1065 = vmatprep.subr.bf16.mxu0 %v1064_v53  ;;  %v273_v28 = vld [vmem:[#allocation5 + $0x170] sm:$0xff]  ;;  %v1104_v30 = vpack.c.bf16 %v290_v27, %v289_v26  ;;  %v274_v31 = vld [vmem:[#allocation5 + $0x178] sm:$0xff]  ;;  %v308_v34 = vld [vmem:[#allocation5 + $0x288] sm:$0xff] }
  0x66   :  { %1095 = vmatpush3.bf16.msra.mxu1 %v1094_v50  ;;  %v1106_v32 = vpack.c.bf16 %v274_v31, %v273_v28  ;;  %v1108_v35 = vpack.c.bf16 %v308_v34, %v307_v33  ;;  %v184_v49 = vsub.s32 %v181_v45, %v1484_v4  ;;  %v191_v50 = vsub.s32 %v188_v46, %v1484_v4  ;;  %v291_v11 = vld [vmem:[#allocation5 + $0x200] sm:$0xff]  ;;  %v293_v26 = vld [vmem:[#allocation5 + $0x210] sm:$0xff]  ;;  %v294_v27 = vld [vmem:[#allocation5 + $0x218] sm:$0xff] }
  0x67   :  { %1097 = vmatprep.subr.bf16.mxu1 %v1096_v61  ;;  %v198_v51 = vsub.s32 %v195_v47, %v1484_v4  ;;  %v296_v33 = vld [vmem:[#allocation5 + $0x228] sm:$0xff]  ;;  %v313_v34 = vld [vmem:[#allocation5 + $0x2b0] sm:$0xff]  ;;  %v298_v39 = vld [vmem:[#allocation5 + $0x238] sm:$0xff] }
  0x68   :  { %1067 = vmatpush3.bf16.msra.mxu0 %v1066_v57  ;;  %v297_v38 = vld [vmem:[#allocation5 + $0x230] sm:$0xff]  ;;  %v315_v40 = vld [vmem:[#allocation5 + $0x2c0] sm:$0xff]  ;;  %v316_v41 = vld [vmem:[#allocation5 + $0x2c8] sm:$0xff] }
  0x69   :  { %1069 = vmatprep.subr.bf16.mxu0 %v1068_v2  ;;  %v1122_v42 = vpack.c.bf16 %v298_v39, %v297_v38  ;;  %v1124_v43 = vpack.c.bf16 %v316_v41, %v315_v40  ;;  %v299_v44 = vld [vmem:[#allocation5 + $0x240] sm:$0xff]  ;;  %v300_v45 = vld [vmem:[#allocation5 + $0x248] sm:$0xff]  ;;  %v317_v46 = vld [vmem:[#allocation5 + $0x2d0] sm:$0xff] }
  0x6a   :  { %1099 = vmatpush3.bf16.msra.mxu1 %v1098_v62  ;;  %v318_v47 = vld [vmem:[#allocation5 + $0x2d8] sm:$0xff]  ;;  %v1126_v48 = vpack.c.bf16 %v300_v45, %v299_v44  ;;  %v710_v40 = vld [vmem:[#allocation8 + $0x40] sm:$0xff]  ;;  %v711_v41 = vld [vmem:[#allocation8 + $0x48] sm:$0xff] }
  0x6b   :  { %1101 = vmatprep.subr.bf16.mxu1 %v1100_v17  ;;  %v310_v17 = vld [vmem:[#allocation5 + $0x298] sm:$0xff] }
  0x6c   :  { %1071 = vmatpush3.bf16.msra.mxu0 %v1070_v13  ;;  %v309_v13 = vld [vmem:[#allocation5 + $0x290] sm:$0xff]  ;;  %v709_v38 = vld [vmem:[#allocation8 + $0x38] sm:$0xff] }
  0x6d   :  { %1073 = vmatprep.subr.bf16.mxu0 %v1072_v25  ;;  %v1112_v25 = vpack.c.bf16 %v310_v17, %v309_v13  ;;  %v616_v13 = vld [vmem:[#allocation7 + $0x40] sm:$0xff]  ;;  %v617_v17 = vld [vmem:[#allocation7 + $0x48] sm:$0xff]  ;;  %v713_v44 = vld [vmem:[#allocation8 + $0x58] sm:$0xff] }
  0x6e   :  { %1103 = vmatpush3.bf16.msra.mxu1 %v1102_v21 }
  0x6f   :  { %1105 = vmatprep.subr.bf16.mxu1 %v1104_v30  ;;  %v312_v30 = vld [vmem:[#allocation5 + $0x2a8] sm:$0xff] }
  0x70   :  { %1075 = vmatpush3.bf16.msra.mxu0 %v1074_v29  ;;  %v311_v29 = vld [vmem:[#allocation5 + $0x2a0] sm:$0xff] }
  0x71   :  { %1109 = vmatprep.subr.bf16.mxu0 %v1108_v35  ;;  %v1116_v31 = vpack.c.bf16 %v312_v30, %v311_v29  ;;  %v314_v35 = vld [vmem:[#allocation5 + $0x2b8] sm:$0xff]  ;;  %v702_v29 = vld [vmem:[#allocation8] sm:$0xff]  ;;  %v703_v30 = vld [vmem:[#allocation8 + $0x8] sm:$0xff] }
  0x72   :  { %1107 = vmatpush3.bf16.msra.mxu1 %v1106_v32  ;;  %v295_v32 = vld [vmem:[#allocation5 + $0x220] sm:$0xff]  ;;  %v1120_v37 = vpack.c.bf16 %v314_v35, %v313_v34  ;;  %v707_v35 = vld [vmem:[#allocation8 + $0x28] sm:$0xff] }
  0x73   :  { %v706_v34 = vld [vmem:[#allocation8 + $0x20] sm:$0xff] }
  0xef   :  { %v175_v36 = vpop.xlane.xlu0 %174 }
  0xf0   :  { %1208 = vrsqrt.f32 %v175_v36  ;;  %v1118_v36 = vpack.c.bf16 %v296_v33, %v295_v32  ;;  %v705_v32 = vld [vmem:[#allocation8 + $0x18] sm:$0xff] }
  0xfa   :  { %v1209_v53 = vpop.eup %1208 }
  0xfb   :  { %v177_v54 = vmin.f32 %v1209_v53, 1e+12  ;;  %v320_v53 = vld [vmem:[#allocation5 + $0x2e8] sm:$0xff] }
  0xfd   :  { %v185_v55 = vrot.slane %v177_v54, %v184_v49  ;;  %v192_v56 = vrot.slane %v177_v54, %v191_v50  ;;  %v199_v57 = vrot.slane %v177_v54, %v198_v51  ;;  %v206_v58 = vrot.slane %v177_v54, %v205_v52  ;;  %v301_v50 = vld [vmem:[#allocation5 + $0x250] sm:$0xff]  ;;  %v302_v51 = vld [vmem:[#allocation5 + $0x258] sm:$0xff]  ;;  %v319_v52 = vld [vmem:[#allocation5 + $0x2e0] sm:$0xff] }
  0xfe   :  { %v1128_v49 = vpack.c.bf16 %v318_v47, %v317_v46  ;;  %v1130_v54 = vpack.c.bf16 %v302_v51, %v301_v50  ;;  %v714_v46 = vld [vmem:[#allocation8 + $0x60] sm:$0xff]  ;;  %v715_v47 = vld [vmem:[#allocation8 + $0x68] sm:$0xff]  ;;  %v832_v51 = vld [vmem:[%s1607_s2] ss:$0 sm:$0xff] }
  0xff   :  { %v211_v59 = vmul.f32 %v185_v55, %v1486_v5  ;;  %v213_v60 = vmul.f32 %v192_v56, %v1490_v7  ;;  %v215_v61 = vmul.f32 %v199_v57, %v1494_v9  ;;  %v217_v62 = vmul.f32 %v206_v58, %v1507_v15  ;;  %v292_v9 = vld [vmem:[#allocation5 + $0x208] sm:$0xff] }
 0x100   :  { %v212_v63 = vmul.f32 %v185_v55, %v1488_v6  ;;  %v214_v0 = vmul.f32 %v192_v56, %v1492_v8  ;;  %v216_v4 = vmul.f32 %v199_v57, %v1496_v10  ;;  %v218_v1 = vmul.f32 %v206_v58, %v1509_v16  ;;  %v303_v56 = vld [vmem:[#allocation5 + $0x260] sm:$0xff]  ;;  %v304_v57 = vld [vmem:[#allocation5 + $0x268] sm:$0xff]  ;;  %v321_v58 = vld [vmem:[#allocation5 + $0x2f0] sm:$0xff] }
 0x101   :  { %219 = vst [vmem:[#allocation10] sm:$0xff] %v211_v59  ;;  %221 = vst [vmem:[#allocation10 + $0xc] sm:$0xff] %v213_v60  ;;  %v338_v2 = vcombine.low %v211_v59, %v213_v60  ;;  %v340_v5 = vcombine.low %v215_v61, %v217_v62  ;;  %v339_v3 = vcombine.high %v211_v59, %v213_v60  ;;  %v322_v59 = vld [vmem:[#allocation5 + $0x2f8] sm:$0xff] }
 0x102   :  { %223 = vst [vmem:[#allocation10 + $0x18] sm:$0xff] %v215_v61  ;;  %225 = vst [vmem:[#allocation10 + $0x24] sm:$0xff] %v217_v62  ;;  %v341_v7 = vcombine.high %v215_v61, %v217_v62  ;;  %v374_v6 = vcombine.low %v212_v63, %v214_v0  ;;  %v375_v8 = vcombine.low %v216_v4, %v218_v1  ;;  %v305_v62 = vld [vmem:[#allocation5 + $0x270] sm:$0xff] }
 0x103   :  { %220 = vst [vmem:[#allocation10 + $0x8] sm:$0xf] %v212_v63  ;;  %222 = vst [vmem:[#allocation10 + $0x14] sm:$0xf] %v214_v0  ;;  %v348_v10 = vrot.slane %v338_v2, %v1505_v14  ;;  %v362_v15 = vrot.slane %v340_v5, %v1505_v14  ;;  %v355_v16 = vrot.slane %v339_v3, %v1505_v14  ;;  %v306_v63 = vld [vmem:[#allocation5 + $0x278] sm:$0xff]  ;;  %v609_v2 = vld [vmem:[#allocation7 + $0x8] sm:$0xff] }
 0x104   :  { %224 = vst [vmem:[#allocation10 + $0x20] sm:$0xf] %v216_v4  ;;  %226 = vst [vmem:[#allocation10 + $0x2c] sm:$0xf] %v218_v1  ;;  %v369_v12 = vrot.slane %v341_v7, %v1505_v14  ;;  %v1110_v18 = vpack.c.bf16 %v292_v9, %v291_v11  ;;  %v1544_v19 = vrot.slane %v374_v6, %v1505_v14  ;;  %v608_v1 = vld [vmem:[#allocation7] sm:$0xff]  ;;  %v1365_v3 = vmov 0.0|0.0  }
 0x105   :  { %v1547_v20 = vrot.slane %v375_v8, %v1505_v14  ;;  %v371_v21 = vcombine.high %v348_v10, %v362_v15  ;;  %v370_v23 = vcombine.low %v348_v10, %v362_v15  ;;  %v1114_v14 = vpack.c.bf16 %v294_v27, %v293_v26  ;;  %1140 = vmatprep.subr.bf16.mxu1 %v1365_v3  ;;  %v610_v7 = vld [vmem:[#allocation7 + $0x10] sm:$0xff]  ;;  %v611_v11 = vld [vmem:[#allocation7 + $0x18] sm:$0xff]  ;;  %v612_v6 = vld [vmem:[#allocation7 + $0x20] sm:$0xff] }
 0x106   :  { %v373_v22 = vcombine.high %v355_v16, %v369_v12  ;;  %v372_v24 = vcombine.low %v355_v16, %v369_v12  ;;  %v1132_v55 = vpack.c.bf16 %v320_v53, %v319_v52  ;;  %v1134_v60 = vpack.c.bf16 %v304_v57, %v303_v56  ;;  %v613_v8 = vld [vmem:[#allocation7 + $0x28] sm:$0xff]  ;;  %v614_v15 = vld [vmem:[#allocation7 + $0x30] sm:$0xff]  ;;  %v615_v16 = vld [vmem:[#allocation7 + $0x38] sm:$0xff] }
 0x107   :  { %462 = vmatprep.mubr.f32.mxu0 %v371_v21  ;;  %v391_v28 = vcombine.high %v1544_v19, %v1547_v20  ;;  %v1136_v61 = vpack.c.bf16 %v322_v59, %v321_v58  ;;  %v1138_v0 = vpack.c.bf16 %v306_v63, %v305_v62  ;;  %v390_v4 = vcombine.low %v1544_v19, %v1547_v20  ;;  %v618_v19 = vld [vmem:[#allocation7 + $0x50] sm:$0xff]  ;;  %v619_v20 = vld [vmem:[#allocation7 + $0x58] sm:$0xff] }
 0x108   :  { %532 = vmatprep.mubr.f32.mxu1 %v373_v22  ;;  %463 = vmatmul.mubr.f32.vlgmr.msra.gmra.mrb[0].mxu0 %v370_v23  ;;  %v1141_v5 = vpack.c.bf16 %v609_v2, %v608_v1  ;;  %v1144_v9 = vpack.c.bf16 %v611_v11, %v610_v7  ;;  %v1147_v10 = vpack.c.bf16 %v613_v8, %v612_v6  ;;  %v620_v22 = vld [vmem:[#allocation7 + $0x60] sm:$0xff]  ;;  %v621_v23 = vld [vmem:[#allocation7 + $0x68] sm:$0xff]  ;;  %v623_v26 = vld [vmem:[#allocation7 + $0x78] sm:$0xff] }
 0x109   :  { %533 = vmatmul.mubr.f32.vlgmr.msra.gmra.mrb[0].mxu1 %v372_v24  ;;  %1111 = vmatpush3.bf16.msra.mxu0 %v1110_v18  ;;  %v1150_v12 = vpack.c.bf16 %v615_v16, %v614_v15  ;;  %v1153_v18 = vpack.c.bf16 %v617_v17, %v616_v13  ;;  %v1156_v21 = vpack.c.bf16 %v619_v20, %v618_v19  ;;  %v716_v62 = vld [vmem:[#allocation8 + $0x70] sm:$0xff]  ;;  %v717_v63 = vld [vmem:[#allocation8 + $0x78] sm:$0xff] }
 0x10a   :  { %602 = vmatprep.mubr.f32.mxu0 %v391_v28  ;;  %1113 = vmatprep.subr.bf16.mxu0 %v1112_v25  ;;  %v1159_v24 = vpack.c.bf16 %v621_v23, %v620_v22  ;;  %v622_v25 = vld [vmem:[#allocation7 + $0x70] sm:$0xff]  ;;  %v1367_v28 = vmov 0.0  }
 0x10b   :  { %1142 = vmatpush3.bf16.msra.mxu1 %v1141_v5  ;;  %v1162_v27 = vpack.c.bf16 %v623_v26, %v622_v25  ;;  %1006 = vmatprep.mubr.msk.f32.mxu1 %vm1366_vm0, %v1367_v28  ;;  %v834_v7 = vld [vmem:[%s1611_s6] ss:$0 sm:$0xff] }
 0x10c   :  { %1143 = vmatprep.subr.bf16.mxu1 %v1365_v3 }
 0x10d   :  { %1115 = vmatpush3.bf16.msra.mxu0 %v1114_v14  ;;  %v704_v14 = vld [vmem:[#allocation8 + $0x10] sm:$0xff] }
 0x10e   :  { %1117 = vmatprep.subr.bf16.mxu0 %v1116_v31  ;;  %v1165_v31 = vpack.c.bf16 %v703_v30, %v702_v29  ;;  %v1168_v33 = vpack.c.bf16 %v705_v32, %v704_v14 }
 0x10f   :  { %1145 = vmatpush3.bf16.msra.mxu1 %v1144_v9 }
 0x110   :  { %1146 = vmatprep.subr.bf16.mxu1 %v1365_v3 }
 0x111   :  { %1119 = vmatpush3.bf16.msra.mxu0 %v1118_v36  ;;  %v1171_v36 = vpack.c.bf16 %v707_v35, %v706_v34 }
 0x112   :  { %1121 = vmatprep.subr.bf16.mxu0 %v1120_v37  ;;  %v708_v37 = vld [vmem:[#allocation8 + $0x30] sm:$0xff] }
 0x113   :  { %1148 = vmatpush3.bf16.msra.mxu1 %v1147_v10  ;;  %v1174_v39 = vpack.c.bf16 %v709_v38, %v708_v37 }
 0x114   :  { %1149 = vmatprep.subr.bf16.mxu1 %v1365_v3 }
 0x115   :  { %1123 = vmatpush3.bf16.msra.mxu0 %v1122_v42  ;;  %v1177_v42 = vpack.c.bf16 %v711_v41, %v710_v40 }
 0x116   :  { %1125 = vmatprep.subr.bf16.mxu0 %v1124_v43  ;;  %v712_v43 = vld [vmem:[#allocation8 + $0x50] sm:$0xff] }
 0x117   :  { %1151 = vmatpush3.bf16.msra.mxu1 %v1150_v12  ;;  %v1180_v45 = vpack.c.bf16 %v713_v44, %v712_v43 }
 0x118   :  { %1152 = vmatprep.subr.bf16.mxu1 %v1365_v3 }
 0x119   :  { %1127 = vmatpush3.bf16.msra.mxu0 %v1126_v48  ;;  %v1183_v48 = vpack.c.bf16 %v715_v47, %v714_v46 }
 0x11a   :  { %1129 = vmatprep.subr.bf16.mxu0 %v1128_v49 }
 0x11b   :  { %1154 = vmatpush3.bf16.msra.mxu1 %v1153_v18 }
 0x11c   :  { %1155 = vmatprep.subr.bf16.mxu1 %v1365_v3 }
 0x11d   :  { %1131 = vmatpush3.bf16.msra.mxu0 %v1130_v54 }
 0x11e   :  { %1133 = vmatprep.subr.bf16.mxu0 %v1132_v55 }
 0x11f   :  { %1157 = vmatpush3.bf16.msra.mxu1 %v1156_v21 }
 0x120   :  { %1158 = vmatprep.subr.bf16.mxu1 %v1365_v3 }
 0x121   :  { %1135 = vmatpush3.bf16.msra.mxu0 %v1134_v60 }
 0x122   :  { %1137 = vmatprep.subr.bf16.mxu0 %v1136_v61 }
 0x123   :  { %1160 = vmatpush3.bf16.msra.mxu1 %v1159_v24 }
 0x124   :  { %1161 = vmatprep.subr.bf16.mxu1 %v1365_v3 }
 0x125   :  { %1139 = vmatpush3.bf16.msra.mxu0 %v1138_v0  ;;  %v1186_v0 = vpack.c.bf16 %v717_v63, %v716_v62 }
 0x126   :  { %1164 = vmatprep.subr.bf16.mxu0 %v1365_v3 }
 0x127   :  { %1163 = vmatpush3.bf16.msra.mxu1 %v1162_v27 }
 0x128   :  { %603 = vmatmul.mubr.f32.vlgmr.msra.gmra.mrb[2].mxu0 %v390_v4  ;;  %v833_v4 = vld [vmem:[%s1609_s4] ss:$0 sm:$0xff] }
 0x129   :  { %1041 = vmatprep.mubr.msk.f32.mxu0 %vm1366_vm0, %v1367_v28  ;;  %1166 = vmatpush3.bf16.msra.mxu0 %v1165_v31 }
 0x12a   :  { %1167 = vmatprep.subr.bf16.mxu0 %v1365_v3 }
 0x12d   :  { %1169 = vmatpush3.bf16.msra.mxu0 %v1168_v33 }
 0x12e   :  { %1170 = vmatprep.subr.bf16.mxu0 %v1365_v3 }
 0x131   :  { %1172 = vmatpush3.bf16.msra.mxu0 %v1171_v36 }
 0x132   :  { %1173 = vmatprep.subr.bf16.mxu0 %v1365_v3 }
 0x135   :  { %1175 = vmatpush3.bf16.msra.mxu0 %v1174_v39 }
 0x136   :  { %1176 = vmatprep.subr.bf16.mxu0 %v1365_v3 }
 0x139   :  { %1178 = vmatpush3.bf16.msra.mxu0 %v1177_v42 }
 0x13a   :  { %1179 = vmatprep.subr.bf16.mxu0 %v1365_v3 }
 0x13d   :  { %1181 = vmatpush3.bf16.msra.mxu0 %v1180_v45 }
 0x13e   :  { %1182 = vmatprep.subr.bf16.mxu0 %v1365_v3 }
 0x141   :  { %1184 = vmatpush3.bf16.msra.mxu0 %v1183_v48 }
 0x142   :  { %1185 = vmatprep.subr.bf16.mxu0 %v1365_v3 }
 0x145   :  { %1187 = vmatpush3.bf16.msra.mxu0 %v1186_v0 }
 0x1db   :  { %v867_v49 = vpop.f32.mrb[0].mxu0 }
 0x1dc   :  { %v902_v50 = vpop.f32.mrb[0].mxu1  ;;  %v868_v52 = vpop.f32.mrb[1].mxu0 }
 0x1dd   :  { %v903_v53 = vpop.f32.mrb[1].mxu1  ;;  %v869_v54 = vadd.f32 %v868_v52, %v867_v49 }
 0x1de   :  { %v904_v55 = vadd.f32 %v903_v53, %v902_v50 }
 0x1df   :  { %v465_v56 = vadd.f32 %v869_v54, %v832_v51 }
 0x1e1   :  { %v535_v57 = vadd.f32 %v904_v55, %v465_v56 }
 0x1fb   :  { %v937_v58 = vpop.f32.mrb[2].mxu0 }
 0x1fc   :  { %v938_v59 = vpop.f32.mrb[3].mxu0 }
 0x1fd   :  { %v939_v60 = vadd.f32 %v938_v59, %v937_v58 }
 0x1ff   :  { %v605_v61 = vadd.f32 %v939_v60, %v535_v57 }
 0x201   :  { %1007 = vmatmul.mubr.f32.vlgmr.msra.gmra.mrb[2].mxu1 %v605_v61 }
 0x2d4   :  { %v697_v1 = vpop.f32.mrb[2].mxu1 }
 0x2d5   :  { %v698_v2 = vadd.f32 %v833_v4, %v697_v1  ;;  %v1008_v5 = vpop.f32.mrb[3].mxu1 }
 0x2d7   :  { %v701_v3 = vmax.f32 %v698_v2, 0.0 }
 0x2d9   :  { %1042 = vmatmul.mubr.f32.vlgmr.msra.gmra.mrb[4].mxu0 %v701_v3 }
 0x3ac   :  { %v791_v11 = vpop.f32.mrb[4].mxu0 }
 0x3ad   :  { %v792_v9 = vadd.f32 %v834_v7, %v791_v11  ;;  %v1043_v6 = vpop.f32.mrb[5].mxu0 }
 0x3af   :  { %v795_v8 = vadd.f32 %v792_v9, %v605_v61 }
 0x3b1   :  { %796 = vst [vmem:[#allocation11] sm:$0xff] %v795_v8 }
 0x3b2   :  { %801 = vsyncadd [#allocation4], 576  ;;  %s1368_s18 = smov [#allocation10]  }
 0x3b3   :  { %s802_s19 = sshll.u32 %s1368_s18, 4  ;;  %s803_s19 = int_to_ptr.vmem [resolvable:$true] %s802_s19 }
 0x3b4   :  { %s1298_s21 = scalar_lea.vmem %s803_s19, 192  ;;  %s1302_s4 = scalar_lea.vmem %s803_s19, 768 }
 0x3b5   :  { %p1299_p4 = scmp.ne.s32.totalorder %s803_s19, %s1298_s21  ;;  %p1303_p5 = scmp.lt.s32.totalorder %s803_s19, %s803_s19 }
 0x3b6   :  { %p1304_p6 = scmp.lt.s32.totalorder %s1302_s4, %s1298_s21 }
 0x3b8   :  { %p1305_p7 = por %p1304_p6, %p1303_p5 }
 0x3ba   :  { %p1306_p8 = pnand %p1305_p7, %p1299_p4 }
 0x3bc   :  { %1309 = shalt.err (!%p1306_p8)
}
 0x3bd   :  { %s1310_s6 = scalar_lea.hbm %s1612_s7, 192 }
 0x3be   :  { %p1311_p9 = scmp.ne.s32.totalorder %s1612_s7, %s1310_s6  ;;  %p1314_p10 = scmp.lt.u32.totalorder %s1310_s6, %s1612_s7 }
 0x3c0   :  { %p1316_p11 = pnand %p1314_p10, %p1311_p9 }
 0x3c2   :  { %1319 = shalt.err (!%p1316_p11)
}
 0x3c3   :  { %808 = dma.vmem_to_hbm [thread:$0]  %s803_s19, 192, %s1612_s7, [#allocation4], %s1356_s28, %s1356_s28, %s1357_s30  }
 0x3c4   :  { %813 = vsyncadd [#allocation12], 96  ;;  %s1369_s29 = smov [#allocation11]  }
 0x3c5   :  { %s814_s1 = sshll.u32 %s1369_s29, 4  ;;  %s815_s1 = int_to_ptr.vmem [resolvable:$true] %s814_s1 }
 0x3c6   :  { %s1320_s9 = scalar_lea.vmem %s815_s1, 32  ;;  %s1324_s10 = scalar_lea.vmem %s815_s1, 128 }
 0x3c7   :  { %p1321_p12 = scmp.ne.s32.totalorder %s815_s1, %s1320_s9  ;;  %p1325_p13 = scmp.lt.s32.totalorder %s815_s1, %s815_s1 }
 0x3c8   :  { %p1326_p0 = scmp.lt.s32.totalorder %s1324_s10, %s1320_s9 }
 0x3ca   :  { %p1327_p1 = por %p1326_p0, %p1325_p13 }
 0x3cc   :  { %p1328_p2 = pnand %p1327_p1, %p1321_p12 }
 0x3ce   :  { %1331 = shalt.err (!%p1328_p2)
}
 0x3cf   :  { %s1332_s3 = scalar_lea.hbm %s1613_s8, 32 }
 0x3d0   :  { %p1333_p3 = scmp.ne.s32.totalorder %s1613_s8, %s1332_s3  ;;  %p1336_p4 = scmp.lt.u32.totalorder %s1332_s3, %s1613_s8 }
 0x3d2   :  { %p1338_p5 = pnand %p1336_p4, %p1333_p3 }
 0x3d4   :  { %1341 = shalt.err (!%p1338_p5)
}
 0x3d5   :  { %s1370_s30 = smov 32   ;;  %s1371_s15 = smov 2  }
 0x3d6   :  { %820 = dma.vmem_to_hbm [thread:$0]  %s815_s1, 32, %s1613_s8, [#allocation12], %s1370_s30, %s1370_s30, %s1371_s15  }
 0x3d7   :  { %1348 = dma.done.wait [#allocation4], 768  }
 0x3d8   :  { %1349 = vsyncadd [#allocation4], 4294966528 }
 0x3d9   :  { %1350 = dma.done.wait [#allocation12], 128  }
 0x3da   :  { %1351 = vsyncadd [#allocation12], 4294967168 }
 0x3db   :  { %827 = vsyncpa [#allocation3], 1 }
 0x3dc   :  { %828 = vsyncpa [#allocation6], 1 }
 0x3dd   :  { %829 = vsyncpa [#allocation9], 1 }
 0x3de   :  { %830 = vsyncpa [#allocation4], 1 }
 0x3df   :  { %831 = vsyncpa [#allocation12], 1 }

</bundles_post_ra>
